<compile_context>
chip_gen: v7x
topology: tpu7x:2x2x1
jax: 0.10.0
libtpu: 0.0.40
codegen_flags: <defaults>
</compile_context>

<pallas_src>
import functools

import jax
import jax.numpy as jnp
from jax.experimental import pallas as pl
from jax.experimental.pallas import tpu as pltpu


def _round_up(x, m):
    return ((x + m - 1) // m) * m


def _ocnn_kernel(data_ref, w1t_ref, b1_ref, w2t_ref, b2_ref, r_ref, nu_ref,
                 out_ref, obj_ref, acc_ref, *, batch, block_rows):
    i = pl.program_id(0)

    @pl.when(i == 0)
    def _init():
        acc_ref[...] = jnp.zeros_like(acc_ref)

    # fc1 + sigmoid  (MXU matmul, sigmoid on the EUP path).
    pre1 = jnp.dot(data_ref[...], w1t_ref[...],
                   preferred_element_type=jnp.float32) + b1_ref[...]
    hidden = jax.nn.sigmoid(pre1)                                   # (TB, H)

    # fc2.
    output = jnp.dot(hidden, w2t_ref[...],
                     preferred_element_type=jnp.float32) + b2_ref[...]  # (TB, 1)
    out_ref[...] = output   # rows past B in a ragged last tile are dropped

    # Accumulate sum(relu(r - output)) over the valid rows of this tile.
    relu_vals = jnp.maximum(r_ref[0] - output, 0.0)                 # (TB, 1)
    if batch % block_rows != 0:   # static: only mask if there is a ragged tile
        row = i * block_rows + jax.lax.broadcasted_iota(
            jnp.int32, relu_vals.shape, 0)
        relu_vals = jnp.where(row < batch, relu_vals, 0.0)
    acc_ref[...] += jnp.sum(relu_vals, axis=0, keepdims=True)       # (1, 1)

    # Final step: weight norms (computed once) + mean + 1/nu scale.
    @pl.when(i == pl.num_programs(0) - 1)
    def _finalize():
        w1t = w1t_ref[...]
        w2t = w2t_ref[...]
        t1 = 0.5 * jnp.sqrt(jnp.sum(w1t * w1t))   # ||W1||_F (transpose-invariant)
        t2 = 0.5 * jnp.sqrt(jnp.sum(w2t * w2t))   # ||W2||_F
        inv = 1.0 / (nu_ref[0] * batch)
        obj_ref[...] = (t1 + t2) + acc_ref[...] * inv


def ocnn_forward(data, w1, b1, w2, b2, r, nu, *, block_rows=4096):
    """data: (B, D); w1: (H, D); b1: (H,); w2: (1, H); b2: (1,); r: (1,); nu scalar."""
    data = jnp.asarray(data, jnp.float32)
    B, D = data.shape
    H = w1.shape[0]

    w1t = jnp.asarray(w1, jnp.float32).T                  # (D, H)
    b1r = jnp.asarray(b1, jnp.float32).reshape(1, H)      # (1, H)
    w2t = jnp.asarray(w2, jnp.float32).T                  # (H, 1)
    b2r = jnp.asarray(b2, jnp.float32).reshape(1, 1)      # (1, 1)
    r_s = jnp.asarray(r, jnp.float32).reshape(1)          # (1,)  SMEM scalar
    nu_s = jnp.asarray(nu, jnp.float32).reshape(1)        # (1,)  SMEM scalar

    tb = min(block_rows, _round_up(B, 8))                 # sublane-aligned tile
    grid = (pl.cdiv(B, tb),)

    kernel = functools.partial(_ocnn_kernel, batch=B, block_rows=tb)

    smem = pl.BlockSpec(memory_space=pltpu.MemorySpace.SMEM)
    cost = pl.CostEstimate(
        flops=2 * B * D * H + 2 * B * H,
        transcendentals=B * H,
        bytes_accessed=4 * (B * D + B + D * H + 2 * H + 2),
    )

    out, obj = pl.pallas_call(
        kernel,
        out_shape=(
            jax.ShapeDtypeStruct((B, 1), jnp.float32),
            jax.ShapeDtypeStruct((1, 1), jnp.float32),
        ),
        grid_spec=pltpu.PrefetchScalarGridSpec(
            num_scalar_prefetch=0,
            grid=grid,
            in_specs=[
                pl.BlockSpec((tb, D), lambda i: (i, 0)),   # data: streamed tiles
                pl.BlockSpec((D, H), lambda i: (0, 0)),    # W1^T: resident
                pl.BlockSpec((1, H), lambda i: (0, 0)),    # b1:   resident
                pl.BlockSpec((H, 1), lambda i: (0, 0)),    # W2^T: resident
                pl.BlockSpec((1, 1), lambda i: (0, 0)),    # b2:   resident
                smem,                                      # r  (scalar)
                smem,                                      # nu (scalar)
            ],
            out_specs=(
                pl.BlockSpec((tb, 1), lambda i: (i, 0)),   # output tiles
                pl.BlockSpec((1, 1), lambda i: (0, 0)),    # objective (last step)
            ),
            scratch_shapes=[pltpu.VMEM((1, 1), jnp.float32)],  # relu-sum accum
        ),
        compiler_params=pltpu.CompilerParams(
            # Accumulator + single objective block make the batch axis a
            # reduction axis -> "arbitrary".
            dimension_semantics=("arbitrary",),
            vmem_limit_bytes=32 * 1024 * 1024,
        ),
        cost_estimate=cost,
    )(data, w1t, b1r, w2t, b2r, r_s, nu_s)

    # PyTorch returns obj with shape (1,) (broadcast with r of shape (1,)).
    return out, obj.reshape(1), jnp.asarray(r, jnp.float32).reshape(1)


def _reference(data, w1, b1, w2, b2, r, nu):
    hidden = jax.nn.sigmoid(data @ w1.T + b1)
    output = hidden @ w2.T + b2
    t1 = 0.5 * jnp.linalg.norm(w1)
    t2 = 0.5 * jnp.linalg.norm(w2)
    t3 = (1.0 / nu) * jnp.mean(jax.nn.relu(r[0] - output))
    return output, (t1 + t2 + t3) * jnp.ones((1,), jnp.float32)


def _check(batch, input_size, hidden_size, nu, block_rows, key):
    k_data, k_w1, k_b1, k_w2, k_b2 = jax.random.split(key, 5)
    data = jax.random.normal(k_data, (batch, input_size), jnp.float32)
    w1 = jax.random.normal(k_w1, (hidden_size, input_size), jnp.float32) * 0.1
    b1 = jax.random.normal(k_b1, (hidden_size,), jnp.float32) * 0.1
    w2 = jax.random.normal(k_w2, (1, hidden_size), jnp.float32) * 0.1
    b2 = jax.random.normal(k_b2, (1,), jnp.float32) * 0.1
    r = jnp.ones((1,), jnp.float32)   # torch.randn(1)*0 + 1 == 1.0

    out, obj, r_out = ocnn_forward(data, w1, b1, w2, b2, r, nu,
                                   block_rows=block_rows)
    jax.block_until_ready((out, obj, r_out))

    ref_out, ref_obj = _reference(data, w1, b1, w2, b2, r, nu)
    assert out.shape == (batch, 1) and obj.shape == (1,) and r_out.shape == (1,)
    assert jnp.allclose(out, ref_out, atol=1e-5, rtol=1e-5)
    assert jnp.allclose(obj, ref_obj, atol=1e-5, rtol=1e-5)
    assert jnp.allclose(r_out, r)


if __name__ == "__main__":
    key = jax.random.PRNGKey(0)
    k1, k2 = jax.random.split(key)
    # Small shape consistent with the module (single-tile path).
    _check(batch=8, input_size=16, hidden_size=32, nu=0.1, block_rows=4096, key=k1)
    # Multi-tile + ragged last tile (exercises grid, accumulator, masking).
    _check(batch=300, input_size=16, hidden_size=32, nu=0.1, block_rows=128, key=k2)
    print("KERNEL_OK")
</pallas_src>

<mosaic_0001>
module attributes {stable_mosaic.version = 11 : i64} {
  func.func @_ocnn_kernel(%arg0: i32, %arg1: memref<8x16xf32, #tpu.memory_space<vmem>>, %arg2: memref<16x32xf32, #tpu.memory_space<vmem>>, %arg3: memref<1x32xf32, #tpu.memory_space<vmem>>, %arg4: memref<32x1xf32, #tpu.memory_space<vmem>>, %arg5: memref<1x1xf32, #tpu.memory_space<vmem>>, %arg6: memref<1xf32, #tpu.memory_space<smem>>, %arg7: memref<1xf32, #tpu.memory_space<smem>>, %arg8: memref<8x1xf32, #tpu.memory_space<vmem>>, %arg9: memref<1x1xf32, #tpu.memory_space<vmem>>, %arg10: memref<1x1xf32, #tpu.memory_space<vmem>>) attributes {dimension_semantics = [#tpu.dimension_semantics<arbitrary>], iteration_bounds = array<i64: 1>, scalar_prefetch = 0 : i64, scratch_operands = 1 : i64, tpu.core_type = #tpu.core_type<tc>, window_params = [{transform_indices = @transform_0, window_bounds = array<i64: 8, 16>}, {pipeline_mode = #tpu.pipeline_mode<synchronous>, transform_indices = @transform_1, window_bounds = array<i64: 16, 32>}, {pipeline_mode = #tpu.pipeline_mode<synchronous>, transform_indices = @transform_2, window_bounds = array<i64: 1, 32>}, {pipeline_mode = #tpu.pipeline_mode<synchronous>, transform_indices = @transform_3, window_bounds = array<i64: 32, 1>}, {pipeline_mode = #tpu.pipeline_mode<synchronous>, transform_indices = @transform_4, window_bounds = array<i64: 1, 1>}, {transform_indices = @transform_5, window_bounds = array<i64: 1>}, {transform_indices = @transform_6, window_bounds = array<i64: 1>}, {transform_indices = @transform_7, window_bounds = array<i64: 8, 1>}, {pipeline_mode = #tpu.pipeline_mode<synchronous>, transform_indices = @transform_8, window_bounds = array<i64: 1, 1>}]} {
    %c0_i32 = arith.constant 0 : i32
    %0 = arith.cmpi eq, %arg0, %c0_i32 : i32
    %1 = arith.extui %0 : i1 to i32
    %c0_i32_0 = arith.constant 0 : i32
    %2 = arith.cmpi ne, %1, %c0_i32_0 : i32
    scf.if %2 {
      %cst_23 = arith.constant 0.000000e+00 : f32
      %33 = vector.broadcast %cst_23 : f32 to vector<1x1xf32>
      %c0_24 = arith.constant 0 : index
      %c0_25 = arith.constant 0 : index
      %34 = vector.load %arg10[%c0_24, %c0_25] : memref<1x1xf32, #tpu.memory_space<vmem>>, vector<1x1xf32>
      tpu.vector_store %arg10[%c0_24, %c0_25], %33 {strides = array<i32>} : memref<1x1xf32, #tpu.memory_space<vmem>>, vector<1x1xf32>,
    } else {
    }
    %c0 = arith.constant 0 : index
    %c0_1 = arith.constant 0 : index
    %3 = vector.load %arg1[%c0, %c0_1] : memref<8x16xf32, #tpu.memory_space<vmem>>, vector<8x16xf32>
    %c0_2 = arith.constant 0 : index
    %c0_3 = arith.constant 0 : index
    %4 = vector.load %arg2[%c0_2, %c0_3] : memref<16x32xf32, #tpu.memory_space<vmem>>, vector<16x32xf32>
    %cst = arith.constant dense<0.000000e+00> : vector<8x32xf32>
    %5 = tpu.matmul %3, %4, %cst {dimension_numbers = #tpu.dot_dimension_numbers<[1], [0], [0], [1], [0, 0, 1, 1], [], []>} : vector<8x16xf32>, vector<16x32xf32>, vector<8x32xf32> -> vector<8x32xf32>
    %c0_4 = arith.constant 0 : index
    %c0_5 = arith.constant 0 : index
    %6 = vector.load %arg3[%c0_4, %c0_5] : memref<1x32xf32, #tpu.memory_space<vmem>>, vector<1x32xf32>
    %7 = vector.broadcast %6 : vector<1x32xf32> to vector<8x32xf32>
    %8 = arith.addf %5, %7 : vector<8x32xf32>
    %9 = arith.negf %8 : vector<8x32xf32>
    %10 = math.exp %9 : vector<8x32xf32>
    %cst_6 = arith.constant 1.000000e+00 : f32
    %11 = vector.broadcast %cst_6 : f32 to vector<8x32xf32>
    %12 = arith.addf %11, %10 : vector<8x32xf32>
    %13 = arith.divf %11, %12 : vector<8x32xf32>
    %c0_7 = arith.constant 0 : index
    %c0_8 = arith.constant 0 : index
    %14 = vector.load %arg4[%c0_7, %c0_8] : memref<32x1xf32, #tpu.memory_space<vmem>>, vector<32x1xf32>
    %cst_9 = arith.constant dense<0.000000e+00> : vector<8x1xf32>
    %15 = tpu.matmul %13, %14, %cst_9 {dimension_numbers = #tpu.dot_dimension_numbers<[1], [0], [0], [1], [0, 0, 1, 1], [], []>} : vector<8x32xf32>, vector<32x1xf32>, vector<8x1xf32> -> vector<8x1xf32>
    %c0_10 = arith.constant 0 : index
    %c0_11 = arith.constant 0 : index
    %16 = vector.load %arg5[%c0_10, %c0_11] : memref<1x1xf32, #tpu.memory_space<vmem>>, vector<1x1xf32>
    %17 = vector.broadcast %16 : vector<1x1xf32> to vector<8x1xf32>
    %18 = arith.addf %15, %17 : vector<8x1xf32>
    %c0_12 = arith.constant 0 : index
    %c0_13 = arith.constant 0 : index
    %19 = vector.load %arg8[%c0_12, %c0_13] : memref<8x1xf32, #tpu.memory_space<vmem>>, vector<8x1xf32>
    tpu.vector_store %arg8[%c0_12, %c0_13], %18 {strides = array<i32>} : memref<8x1xf32, #tpu.memory_space<vmem>>, vector<8x1xf32>,
    %c0_14 = arith.constant 0 : index
    %20 = memref.load %arg6[%c0_14] : memref<1xf32, #tpu.memory_space<smem>>
    %21 = vector.broadcast %20 : f32 to vector<8x1xf32>
    %22 = arith.subf %21, %18 : vector<8x1xf32>
    %cst_15 = arith.constant 0.000000e+00 : f32
    %23 = vector.broadcast %cst_15 : f32 to vector<8x1xf32>
    %24 = arith.maximumf %22, %23 : vector<8x1xf32>
    %c0_16 = arith.constant 0 : index
    %c0_17 = arith.constant 0 : index
    %25 = vector.load %arg10[%c0_16, %c0_17] : memref<1x1xf32, #tpu.memory_space<vmem>>, vector<1x1xf32>
    %cst_18 = arith.constant dense<0.000000e+00> : vector<1xf32>
    %26 = vector.multi_reduction <add>, %24, %cst_18 [0] : vector<8x1xf32> to vector<1xf32>
    %27 = vector.shape_cast %26 : vector<1xf32> to vector<1x1xf32>
    %28 = arith.addf %25, %27 : vector<1x1xf32>
    %c0_19 = arith.constant 0 : index
    %c0_20 = arith.constant 0 : index
    %29 = vector.load %arg10[%c0_19, %c0_20] : memref<1x1xf32, #tpu.memory_space<vmem>>, vector<1x1xf32>
    tpu.vector_store %arg10[%c0_19, %c0_20], %28 {strides = array<i32>} : memref<1x1xf32, #tpu.memory_space<vmem>>, vector<1x1xf32>,
    %c0_i32_21 = arith.constant 0 : i32
    %30 = arith.cmpi eq, %arg0, %c0_i32_21 : i32
    %31 = arith.extui %30 : i1 to i32
    %c0_i32_22 = arith.constant 0 : i32
    %32 = arith.cmpi ne, %31, %c0_i32_22 : i32
    scf.if %32 {
      %c0_23 = arith.constant 0 : index
      %c0_24 = arith.constant 0 : index
      %33 = vector.load %arg2[%c0_23, %c0_24] : memref<16x32xf32, #tpu.memory_space<vmem>>, vector<16x32xf32>
      %c0_25 = arith.constant 0 : index
      %c0_26 = arith.constant 0 : index
      %34 = vector.load %arg4[%c0_25, %c0_26] : memref<32x1xf32, #tpu.memory_space<vmem>>, vector<32x1xf32>
      %35 = arith.mulf %33, %33 : vector<16x32xf32>
      %36 = vector.shape_cast %35 : vector<16x32xf32> to vector<1x16x32xf32>
      %cst_27 = arith.constant dense<0.000000e+00> : vector<1xf32>
      %37 = vector.multi_reduction <add>, %36, %cst_27 [1, 2] : vector<1x16x32xf32> to vector<1xf32>
      %38 = vector.shape_cast %37 : vector<1xf32> to vector<1x1x1xf32>
      %39 = vector.extract %38[0, 0, 0] : f32 from vector<1x1x1xf32>
      %40 = math.sqrt %39 : f32
      %cst_28 = arith.constant 5.000000e-01 : f32
      %41 = arith.mulf %cst_28, %40 : f32
      %42 = arith.mulf %34, %34 : vector<32x1xf32>
      %43 = vector.shape_cast %42 : vector<32x1xf32> to vector<1x32x1xf32>
      %cst_29 = arith.constant dense<0.000000e+00> : vector<1xf32>
      %44 = vector.multi_reduction <add>, %43, %cst_29 [1, 2] : vector<1x32x1xf32> to vector<1xf32>
      %45 = vector.shape_cast %44 : vector<1xf32> to vector<1x1x1xf32>
      %46 = vector.extract %45[0, 0, 0] : f32 from vector<1x1x1xf32>
      %47 = math.sqrt %46 : f32
      %cst_30 = arith.constant 5.000000e-01 : f32
      %48 = arith.mulf %cst_30, %47 : f32
      %c0_31 = arith.constant 0 : index
      %49 = memref.load %arg7[%c0_31] : memref<1xf32, #tpu.memory_space<smem>>
      %cst_32 = arith.constant 8.000000e+00 : f32
      %50 = arith.mulf %49, %cst_32 : f32
      %cst_33 = arith.constant 1.000000e+00 : f32
      %51 = arith.divf %cst_33, %50 : f32
      %52 = arith.addf %41, %48 : f32
      %c0_34 = arith.constant 0 : index
      %c0_35 = arith.constant 0 : index
      %53 = vector.load %arg10[%c0_34, %c0_35] : memref<1x1xf32, #tpu.memory_space<vmem>>, vector<1x1xf32>
      %54 = vector.broadcast %51 : f32 to vector<1x1xf32>
      %55 = arith.mulf %53, %54 : vector<1x1xf32>
      %56 = vector.broadcast %52 : f32 to vector<1x1xf32>
      %57 = arith.addf %56, %55 : vector<1x1xf32>
      %c0_36 = arith.constant 0 : index
      %c0_37 = arith.constant 0 : index
      %58 = vector.load %arg9[%c0_36, %c0_37] : memref<1x1xf32, #tpu.memory_space<vmem>>, vector<1x1xf32>
      tpu.vector_store %arg9[%c0_36, %c0_37], %57 {strides = array<i32>} : memref<1x1xf32, #tpu.memory_space<vmem>>, vector<1x1xf32>,
    } else {
    }
    return
  }
  func.func @transform_0(%arg0: i32) -> (i32, i32) {
    %c0_i32 = arith.constant 0 : i32
    %c0_i32_0 = arith.constant 0 : i32
    return %arg0, %c0_i32 : i32, i32
  }
  func.func @transform_1(%arg0: i32) -> (i32, i32) {
    %c0_i32 = arith.constant 0 : i32
    %c0_i32_0 = arith.constant 0 : i32
    %c0_i32_1 = arith.constant 0 : i32
    return %c0_i32, %c0_i32_0 : i32, i32
  }
  func.func @transform_2(%arg0: i32) -> (i32, i32) {
    %c0_i32 = arith.constant 0 : i32
    %c0_i32_0 = arith.constant 0 : i32
    %c0_i32_1 = arith.constant 0 : i32
    return %c0_i32, %c0_i32_0 : i32, i32
  }
  func.func @transform_3(%arg0: i32) -> (i32, i32) {
    %c0_i32 = arith.constant 0 : i32
    %c0_i32_0 = arith.constant 0 : i32
    %c0_i32_1 = arith.constant 0 : i32
    return %c0_i32, %c0_i32_0 : i32, i32
  }
  func.func @transform_4(%arg0: i32) -> (i32, i32) {
    %c0_i32 = arith.constant 0 : i32
    %c0_i32_0 = arith.constant 0 : i32
    %c0_i32_1 = arith.constant 0 : i32
    return %c0_i32, %c0_i32_0 : i32, i32
  }
  func.func @transform_5(%arg0: i32) -> i32 {
    %c0_i32 = arith.constant 0 : i32
    %c0_i32_0 = arith.constant 0 : i32
    return %c0_i32 : i32
  }
  func.func @transform_6(%arg0: i32) -> i32 {
    %c0_i32 = arith.constant 0 : i32
    %c0_i32_0 = arith.constant 0 : i32
    return %c0_i32 : i32
  }
  func.func @transform_7(%arg0: i32) -> (i32, i32) {
    %c0_i32 = arith.constant 0 : i32
    %c0_i32_0 = arith.constant 0 : i32
    return %arg0, %c0_i32 : i32, i32
  }
  func.func @transform_8(%arg0: i32) -> (i32, i32) {
    %c0_i32 = arith.constant 0 : i32
    %c0_i32_0 = arith.constant 0 : i32
    %c0_i32_1 = arith.constant 0 : i32
    return %c0_i32, %c0_i32_0 : i32, i32
  }
}

</mosaic_0001>

<bundles_post_ra>
// kernel: tpu_custom_call.1
= control target key start
LH: loop header
LB: loop body
LE: loop exit
PB: predicated region body
PF: predicated region fallthrough
CT: control target
= control target key end

     0   :  { %s524_s0 = inlined_call_operand.vmem [shape: f32[8,16], index: 0, kind: input, shape index: {}]   ;;  %s525_s1 = inlined_call_operand.vmem [shape: f32[16,32], index: 1, kind: input, shape index: {}]   ;;  %s526_s2 = inlined_call_operand.vmem [shape: f32[1,32], index: 2, kind: input, shape index: {}]   ;;  %s527_s3 = inlined_call_operand.vmem [shape: f32[32,1], index: 3, kind: input, shape index: {}]   ;;  %s528_s4 = inlined_call_operand.<no memory space> [shape: f32[1,1], index: 4, kind: input, shape index: {}]   ;;  %s529_s5 = inlined_call_operand.<no memory space> [shape: f32[1], index: 5, kind: input, shape index: {}]   ;;  %s530_s6 = inlined_call_operand.<no memory space> [shape: f32[1], index: 6, kind: input, shape index: {}]   ;;  %s531_s7 = inlined_call_operand.vmem [shape: f32[8,1], index: 7, kind: output, shape index: {0}]   ;;  %s532_s8 = inlined_call_operand.hbm [shape: f32[1,1], index: 8, kind: output, shape index: {1}]  }
   0x1   :  { %v14_v0 = vstv %s528_s4 }
   0x2   :  { %15 = vst [vmem:[#allocation3] sm:$0x1] %v14_v0 }
   0x3   :  { %v40_v1 = vld [vmem:[%s525_s1] sm:$0xff]  ;;  %v41_v2 = vld [vmem:[%s525_s1 + $0x8] sm:$0xff]  ;;  %vm37_vm0 = vcmask 0   ;;  %v412_v3 = vmov 0.0|0.0   ;;  %v413_v5 = vmov 0.0   ;;  %vm414_vm1 = vmmov 0  }
   0x4   :  { %355 = vmatprep.subr.bf16.mxu0 %v412_v3  ;;  %v356_v4 = vpack.c.bf16 %v41_v2, %v40_v1  ;;  %38 = vst.msk [vmem:[#allocation2] sm:$0x1] %vm37_vm0, %v413_v5  ;;  %341 = vmatprep.mubr.msk.f32.mxu0 %vm414_vm1, %v413_v5  ;;  %vm140_vm2 = vcmask 261120   ;;  %v240_v6 = vmul.f32 %v40_v1, %v40_v1  ;;  %v236_v7 = vld [vmem:[%s527_s3] sm:$0xff]  ;;  %v237_v8 = vld [vmem:[%s527_s3 + $0x8] sm:$0xff]  ;;  %vm214_vm3 = vcmask 7168  }
   0x5   :  { %v241_v9 = vmul.f32 %v41_v2, %v41_v2  ;;  %v238_v10 = vld [vmem:[%s527_s3 + $0x10] sm:$0xff]  ;;  %v239_v11 = vld [vmem:[%s527_s3 + $0x18] sm:$0xff]  ;;  %v264_v12 = vmul.f32 %v236_v7, %v236_v7  ;;  %v265_v13 = vmul.f32 %v237_v8, %v237_v8  ;;  %358 = vmatprep.subr.bf16.mxu1 %v412_v3  ;;  %352 = vmatprep.mubr.msk.f32.mxu1 %vm414_vm1, %v413_v5 }
   0x6   :  { %18 = vsyncpa [#allocation7], 0  ;;  %357 = vmatpush3.bf16.msra.mxu0 %v356_v4  ;;  %v39_v14 = vld [vmem:[%s524_s0] sm:$0xff]  ;;  %vm49_vm4 = vcmask 130048   ;;  %v242_v15 = vsel %vm140_vm2, %v240_v6, 0.0  ;;  %v266_v16 = vmul.f32 %v238_v10, %v238_v10  ;;  %v267_v17 = vmul.f32 %v239_v11, %v239_v11  ;;  %s295_s21 = smul.f32 8.0, %s530_s6 }
   0x7   :  { %v243_v18 = vsel %vm140_vm2, %v241_v9, 0.0  ;;  %v268_v19 = vsel %vm214_vm3, %v264_v12, 0.0  ;;  %v269_v20 = vsel %vm214_vm3, %v265_v13, 0.0  ;;  %v359_v27 = vpack.c.bf16 %v237_v8, %v236_v7  ;;  %v324_v41 = vld [vmem:[%s526_s2] ss:$0 sm:$0xff] }
   0x8   :  { %v244_v21 = vadd.f32 %v243_v18, %v242_v15  ;;  %v270_v22 = vadd.f32 %v269_v20, %v268_v19  ;;  %v271_v23 = vsel %vm214_vm3, %v266_v16, 0.0  ;;  %v273_v24 = vsel %vm214_vm3, %v267_v17, 0.0 }
   0x9   :  { %342 = vmatmul.mubr.msk.f32.vlgmr.msra.gmra.mrb[0].mxu0 %vm49_vm4, %v39_v14  ;;  %360 = vmatpush3.bf16.msra.mxu1 %v359_v27  ;;  %v362_v28 = vpack.c.bf16 %v239_v11, %v238_v10  ;;  %v296_v58 = vstv %s295_s21  ;;  %v327_v1 = vld [vmem:[#allocation3] ss:$0 sm:$0xff] }
   0xa   :  { %245 = vadd.xlane.f32.xlu0 %v244_v21  ;;  %v272_v25 = vadd.f32 %v271_v23, %v270_v22  ;;  %361 = vmatprep.subr.bf16.mxu1 %v412_v3  ;;  %v217_v3 = vstv %s529_s5 }
   0xb   :  { %v220_v14 = vld [vmem:[#allocation2] sm:$0x1] }
   0xc   :  { %v274_v26 = vadd.f32 %v273_v24, %v272_v25 }
   0xd   :  { %363 = vmatpush3.bf16.msra.mxu1 %v362_v28 }
   0xe   :  { %275 = vadd.xlane.f32.xlu0 %v274_v26 }
  0x97   :  { %v246_v29 = vpop.xlane.xlu0 %245 }
  0x98   :  { %v247_v30 = vrot.slane %v246_v29, 4 }
  0x9a   :  { %v248_v31 = vadd.f32 %v247_v30, %v246_v29 }
  0x9b   :  { %v276_v36 = vpop.xlane.xlu0 %275 }
  0x9c   :  { %v249_v32 = vrot.slane %v248_v31, 2  ;;  %v277_v37 = vrot.slane %v276_v36, 4 }
  0x9e   :  { %v250_v33 = vadd.f32 %v249_v32, %v248_v31  ;;  %v278_v38 = vadd.f32 %v277_v37, %v276_v36 }
  0xa0   :  { %v251_v34 = vrot.slane %v250_v33, 1  ;;  %v279_v40 = vrot.slane %v278_v38, 2 }
  0xa2   :  { %v252_v35 = vadd.f32 %v251_v34, %v250_v33  ;;  %v280_v42 = vadd.f32 %v279_v40, %v278_v38 }
  0xa4   :  { %364 = vpush %v252_v35  ;;  %v281_v47 = vrot.slane %v280_v42, 1 }
  0xa6   :  { %v282_v51 = vadd.f32 %v281_v47, %v280_v42 }
  0xd5   :  { %s365_s0 = spop %364 }
  0xd6   :  { %v254_v39 = vstv %s365_s0 }
  0xd7   :  { %378 = vrsqrt.f32 %v254_v39  ;;  %vm257_vm5 = vcmp.eq.f32.partialorder %v254_v39, inf  ;;  %v260_v49 = vand.u32 2147483648, %v254_v39  ;;  %vm259_vm6 = vcmp.eq.f32.partialorder %v254_v39, 0.0 }
  0xdc   :  { %v119_v43 = vpop.f32.mrb[0].mxu0 }
  0xdd   :  { %v120_v44 = vadd.f32 %v324_v41, %v119_v43  ;;  %v343_v45 = vpop.f32.mrb[1].mxu0 }
  0xdf   :  { %v326_v46 = vmul.f32 -1.442695, %v120_v44 }
  0xe1   :  { %v379_v48 = vpop.eup %378  ;;  %380 = vpow2.f32 %v326_v46 }
  0xe2   :  { %v256_v50 = vmul.f32 %v379_v48, %v254_v39 }
  0xe4   :  { %v258_v52 = vsel %vm257_vm5, %v254_v39, %v256_v50 }
  0xe5   :  { %v261_v53 = vsel %vm259_vm6, %v260_v49, %v258_v52 }
  0xe6   :  { %366 = vpush %v261_v53 }
  0xe7   :  { %368 = vpush %v282_v51 }
  0xeb   :  { %v381_v54 = vpop.eup %380 }
  0xec   :  { %v126_v55 = vadd.f32 1.0, %v381_v54 }
  0xee   :  { %382 = vrcp.f32 %v126_v55 }
  0xf8   :  { %v383_v56 = vpop.eup %382 }
  0xf9   :  { %353 = vmatmul.mubr.msk.f32.vlgmr.msra.gmra.mrb[0].mxu1 %vm140_vm2, %v383_v56 }
 0x117   :  { %s499_s22 = spop %366 }
 0x118   :  { %s369_s23 = spop %368  ;;  %s263_s27 = smul.f32 0.5, %s499_s22 }
 0x119   :  { %v284_v57 = vstv %s369_s23 }
 0x11a   :  { %384 = vrsqrt.f32 %v284_v57  ;;  %vm287_vm7 = vcmp.eq.f32.partialorder %v284_v57, inf  ;;  %v290_v60 = vand.u32 2147483648, %v284_v57  ;;  %vm289_vm8 = vcmp.eq.f32.partialorder %v284_v57, 0.0 }
 0x11b   :  { %386 = vrcp.f32 %v296_v58 }
 0x124   :  { %v385_v59 = vpop.eup %384 }
 0x125   :  { %v286_v61 = vmul.f32 %v385_v59, %v284_v57  ;;  %v387_v62 = vpop.eup %386 }
 0x127   :  { %v288_v63 = vsel %vm287_vm7, %v284_v57, %v286_v61 }
 0x128   :  { %v291_v0 = vsel %vm289_vm8, %v290_v60, %v288_v63 }
 0x129   :  { %370 = vpush %v291_v0 }
 0x12a   :  { %372 = vpush %v387_v62 }
 0x15a   :  { %s371_s5 = spop %370 }
 0x15b   :  { %s293_s28 = smul.f32 0.5, %s371_s5  ;;  %s373_s29 = spop %372 }
 0x15c   :  { %v301_v17 = vstv %s373_s29 }
 0x15d   :  { %s299_s30 = sadd.f32 %s293_s28, %s263_s27 }
 0x15f   :  { %v303_v20 = vstv %s299_s30 }
 0x1cc   :  { %v210_v2 = vpop.f32.mrb[0].mxu1 }
 0x1cd   :  { %v211_v4 = vadd.f32 %v327_v1, %v210_v2  ;;  %v354_v5 = vpop.f32.mrb[1].mxu1 }
 0x1cf   :  { %215 = vst.msk [vmem:[%s531_s7] sm:$0xff] %vm214_vm3, %v211_v4  ;;  %v218_v6 = vsub.f32 %v217_v3, %v211_v4  ;;  %s415_s7 = smov [#allocation6]  }
 0x1d0   :  { %s314_s9 = sshll.u32 %s415_s7, 4  ;;  %s315_s9 = int_to_ptr.vmem [resolvable:$true] %s314_s9 }
 0x1d1   :  { %v219_v7 = vmax.f32 %v218_v6, 0.0  ;;  %s388_s10 = scalar_lea.vmem %s315_s9, 16  ;;  %s392_s4 = scalar_lea.vmem %s315_s9, 32 }
 0x1d2   :  { %p389_p0 = scmp.ne.s32.totalorder %s315_s9, %s388_s10  ;;  %p393_p1 = scmp.lt.s32.totalorder %s315_s9, %s315_s9 }
 0x1d3   :  { %v221_v8 = vsel %vm214_vm3, %v219_v7, 0.0  ;;  %p394_p2 = scmp.lt.s32.totalorder %s392_s4, %s388_s10 }
 0x1d4   :  { %v222_v9 = vrot.slane %v221_v8, 4 }
 0x1d5   :  { %p395_p3 = por %p394_p2, %p393_p1 }
 0x1d6   :  { %v223_v10 = vadd.f32 %v222_v9, %v221_v8 }
 0x1d7   :  { %p396_p4 = pnand %p395_p3, %p389_p0 }
 0x1d8   :  { %v224_v11 = vrot.slane %v223_v10, 2 }
 0x1da   :  { %v225_v12 = vadd.f32 %v224_v11, %v223_v10 }
 0x1dc   :  { %v226_v13 = vrot.slane %v225_v12, 1 }
 0x1de   :  { %v227_v15 = vadd.f32 %v226_v13, %v225_v12 }
 0x1e0   :  { %v228_v16 = vadd.f32 %v227_v15, %v220_v14 }
 0x1e2   :  { %230 = vst.msk [vmem:[#allocation2] sm:$0x1] %vm37_vm0, %v228_v16 }
 0x1e9   :  { %v300_v18 = vld [vmem:[#allocation2] sm:$0x1] }
 0x1ea   :  { %v302_v19 = vmul.f32 %v301_v17, %v300_v18 }
 0x1ec   :  { %v304_v21 = vadd.f32 %v303_v20, %v302_v19 }
 0x1ee   :  { %305 = vst.msk [vmem:[#allocation6] sm:$0x1] %vm37_vm0, %v304_v21 }
 0x1ef   :  { %399 = shalt.err (!%p396_p4)
}
 0x1f0   :  { %s400_s13 = scalar_lea.hbm %s532_s8, 16 }
 0x1f1   :  { %p401_p5 = scmp.ne.s32.totalorder %s532_s8, %s400_s13  ;;  %p404_p6 = scmp.lt.u32.totalorder %s400_s13, %s532_s8 }
 0x1f3   :  { %p406_p7 = pnand %p404_p6, %p401_p5 }
 0x1f5   :  { %409 = shalt.err (!%p406_p7)
}
 0x1f6   :  { %317 = dma.vmem_to_hbm [thread:$0]  %s315_s9, 16, %s532_s8, [#allocation7]  }
 0x1f7   :  { %410 = dma.done.wait [#allocation7], 16  }
 0x1f8   :  { %411 = vsyncadd [#allocation7], 4294967280 }
 0x1f9   :  { %323 = vsyncpa [#allocation7], 1 }

</bundles_post_ra>
